<compile_context>
chip_gen: v7x
topology: tpu7x:2x2x1
jax: 0.10.0
libtpu: 0.0.40
codegen_flags: <defaults>
</compile_context>

<pallas_src>
import numpy as np
import jax
import jax.numpy as jnp
from jax.experimental import pallas as pl
from jax.experimental.pallas import tpu as pltpu


_TARGET_BLOCK_BYTES = 1 << 20       # ~1 MiB per stream per block
_MAX_CHANNELS_PER_BLOCK = 64        # bounds the static unroll inside the kernel
_IDENT4 = (0, 1, 2, 3)
_SWAP_LAST2 = (0, 1, 3, 2)


# ----------------------------------------------------------------------------
# Helpers
# ----------------------------------------------------------------------------
def _largest_divisor_at_most(n, cap):
    cap = int(max(1, min(n, cap)))
    for d in range(cap, 0, -1):
        if n % d == 0:
            return d
    return 1


def _spatial_tile(n, max_tile=512):
    """Tile size for a spatial dim: the full dim if it is small (or has no
    aligned divisor), otherwise the largest 128-multiple divisor <= max_tile.
    A 128-multiple is valid both as a sublane dim and as a lane dim, so the
    same tile size works for the (TH, TW) and transposed (TW, TH) blocks."""
    if n <= max_tile:
        return n
    t = (max_tile // 128) * 128
    while t >= 128:
        if n % t == 0:
            return t
        t -= 128
    return n  # no aligned divisor; fall back to the full dim


# ----------------------------------------------------------------------------
# Kernels
# ----------------------------------------------------------------------------
def _fused_max_transpose_kernel(a_ref, b_ref, o_ref):
    # a_ref: (c_blk, TH, TW)  canonical-layout tile
    # b_ref: (c_blk, TW, TH)  swapped-layout tile covering the same output region
    # o_ref: (c_blk, TH, TW)
    # Static unroll over the packed channel planes; each iteration is a proven
    # 2-D XLU transpose + elementwise max + store.
    for c in range(a_ref.shape[0]):
        o_ref[c] = jnp.maximum(a_ref[c], b_ref[c].T)


def _max_kernel(a_ref, b_ref, o_ref):
    o_ref[...] = jnp.maximum(a_ref[...], b_ref[...])


# ----------------------------------------------------------------------------
# Fused single-pass path:  out[n,c,h,w] = max(a[n,c,h,w], b[n,c,w,h])
# ----------------------------------------------------------------------------
def _fused_transposed_max(a, b):
    B, C, H, W = a.shape
    assert b.shape == (B, C, W, H), "swapped operand must have its last two axes transposed"
    BC = B * C
    itemsize = a.dtype.itemsize

    # Free reshapes (contiguous leading-dim merge).
    a3 = a.reshape(BC, H, W)
    b3 = b.reshape(BC, W, H)

    TH = _spatial_tile(H)
    TW = _spatial_tile(W)
    n_h = H // TH
    n_w = W // TW

    tile_bytes = TH * TW * itemsize
    c_cap = min(_MAX_CHANNELS_PER_BLOCK, max(1, _TARGET_BLOCK_BYTES // tile_bytes))
    c_blk = _largest_divisor_at_most(BC, c_cap)
    # Keep >= 2 grid steps when possible so v7x's two TensorCores both get work.
    if BC // c_blk == 1 and n_h * n_w == 1 and BC >= 2:
        c_blk = _largest_divisor_at_most(BC, max(1, BC // 2))
    n_bc = BC // c_blk

    total = BC * H * W
    out3 = pl.pallas_call(
        _fused_max_transpose_kernel,
        out_shape=jax.ShapeDtypeStruct((BC, H, W), a.dtype),
        grid_spec=pltpu.PrefetchScalarGridSpec(
            num_scalar_prefetch=0,
            grid=(n_bc, n_h, n_w),
            in_specs=[
                pl.BlockSpec((c_blk, TH, TW), lambda g, hi, wi: (g, hi, wi)),
                # transpose fused into the index map: the (wi, hi) block of the
                # swapped-layout operand covers exactly the output tile region
                pl.BlockSpec((c_blk, TW, TH), lambda g, hi, wi: (g, wi, hi)),
            ],
            out_specs=pl.BlockSpec((c_blk, TH, TW), lambda g, hi, wi: (g, hi, wi)),
        ),
        compiler_params=pltpu.CompilerParams(
            dimension_semantics=("parallel", "parallel", "parallel")),
        cost_estimate=pl.CostEstimate(
            flops=total, transcendentals=0, bytes_accessed=3 * total * itemsize),
    )(a3, b3)
    return out3.reshape(B, C, H, W)


# ----------------------------------------------------------------------------
# Tiled elementwise-max (general fallback after optional XLA permutes)
# ----------------------------------------------------------------------------
def _tiled_elementwise_max(a, b):
    assert a.shape == b.shape and a.dtype == b.dtype
    shape = a.shape
    itemsize = a.dtype.itemsize
    total = int(np.prod(shape)) if len(shape) > 0 else 1

    # Elementwise op => free to pick any lane-dense 2-D factorization.
    if total % 128 == 0:
        cols = 128
        for cand in (8192, 4096, 2048, 1024, 512, 256, 128):
            if total % cand == 0:
                cols = cand
                break
        rows = total // cols
    else:
        cols = shape[-1] if len(shape) >= 1 else 1
        rows = max(1, total // max(1, cols))

    a2 = a.reshape(rows, cols)
    b2 = b.reshape(rows, cols)

    # Row block: multiple of 8 (or the full row count), targeting ~1 MiB blocks.
    cap = max(1, _TARGET_BLOCK_BYTES // max(1, cols * itemsize))
    if cap >= rows:
        r_blk = rows
    else:
        r_blk = rows
        d = cap - (cap % 8)
        while d >= 8:
            if rows % d == 0:
                r_blk = d
                break
            d -= 8

    out2 = pl.pallas_call(
        _max_kernel,
        out_shape=jax.ShapeDtypeStruct((rows, cols), a.dtype),
        grid_spec=pltpu.PrefetchScalarGridSpec(
            num_scalar_prefetch=0,
            grid=(rows // r_blk,),
            in_specs=[pl.BlockSpec((r_blk, cols), lambda i: (i, 0)),
                      pl.BlockSpec((r_blk, cols), lambda i: (i, 0))],
            out_specs=pl.BlockSpec((r_blk, cols), lambda i: (i, 0)),
        ),
        compiler_params=pltpu.CompilerParams(dimension_semantics=("parallel",)),
        cost_estimate=pl.CostEstimate(
            flops=total, transcendentals=0, bytes_accessed=3 * total * itemsize),
    )(a2, b2)
    return out2.reshape(shape)


# ----------------------------------------------------------------------------
# Wrapper (mirrors the nn.Module forward)
# ----------------------------------------------------------------------------
def transposed_and_add_maxpool(x1, x2, view1Order=(0, 1, 2, 3), view2Order=(0, 1, 3, 2)):
    perm1 = tuple(int(i) for i in np.argsort(view1Order))
    perm2 = tuple(int(i) for i in np.argsort(view2Order))

    # Fused single-pass path: one operand canonical, the other swaps its last
    # two axes -- supported in both directions.
    if x1.ndim == 4 and x2.ndim == 4:
        if perm1 == _IDENT4 and perm2 == _SWAP_LAST2:
            return _fused_transposed_max(x1, x2)
        if perm1 == _SWAP_LAST2 and perm2 == _IDENT4:
            return _fused_transposed_max(x2, x1)

    # General fallback: arbitrary permutations as XLA glue (skipped when the
    # permutation is the identity), then a tiled lane-dense Pallas max kernel.
    # TODO(synk): permutations that keep the minor axes fixed could be folded
    # into BlockSpec index_maps (pure block reindexing, no copy).
    v1 = x1 if perm1 == tuple(range(x1.ndim)) else jnp.transpose(x1, perm1)
    v2 = x2 if perm2 == tuple(range(x2.ndim)) else jnp.transpose(x2, perm2)
    return _tiled_elementwise_max(v1, v2)


# ----------------------------------------------------------------------------
# Demo / correctness check
# ----------------------------------------------------------------------------
if __name__ == "__main__":
    key = jax.random.PRNGKey(0)
    k1, k2, k3, k4 = jax.random.split(key, 4)

    B, C, H, W = 2, 4, 32, 16

    # Typical use: input0 arrives NCHW, input1 arrives NCWH.
    x1 = jax.random.normal(k1, (B, C, H, W), dtype=jnp.float32)
    x2 = jax.random.normal(k2, (B, C, W, H), dtype=jnp.float32)

    out = transposed_and_add_maxpool(x1, x2, (0, 1, 2, 3), (0, 1, 3, 2))
    out = jax.block_until_ready(out)
    ref = jnp.maximum(x1, jnp.transpose(x2, (0, 1, 3, 2)))
    assert out.shape == (B, C, H, W)
    assert jnp.array_equal(out, ref), "fused path mismatch"

    # Reversed direction (input0 NCWH, input1 NCHW) also takes the fused path.
    out_rev = transposed_and_add_maxpool(x2, x1, (0, 1, 3, 2), (0, 1, 2, 3))
    out_rev = jax.block_until_ready(out_rev)
    ref_rev = jnp.maximum(jnp.transpose(x2, (0, 1, 3, 2)), x1)
    assert jnp.array_equal(out_rev, ref_rev), "reversed fused path mismatch"

    # General-permutation fallback (XLA permute + tiled lane-dense max kernel).
    y1 = jax.random.normal(k3, (B, C, H, W), dtype=jnp.float32)
    y2 = jax.random.normal(k4, (C, B, H, W), dtype=jnp.float32)
    out_fb = transposed_and_add_maxpool(y1, y2, (0, 1, 2, 3), (1, 0, 2, 3))
    out_fb = jax.block_until_ready(out_fb)
    ref_fb = jnp.maximum(y1, jnp.transpose(y2, (1, 0, 2, 3)))
    assert jnp.array_equal(out_fb, ref_fb), "fallback path mismatch"

    print("KERNEL_OK")
</pallas_src>

<mosaic_0001>
module attributes {stable_mosaic.version = 11 : i64} {
  func.func @_fused_max_transpose_kernel(%arg0: i32, %arg1: i32, %arg2: i32, %arg3: memref<4x32x16xf32, #tpu.memory_space<vmem>>, %arg4: memref<4x16x32xf32, #tpu.memory_space<vmem>>, %arg5: memref<4x32x16xf32, #tpu.memory_space<vmem>>) attributes {dimension_semantics = [#tpu.dimension_semantics<parallel>, #tpu.dimension_semantics<parallel>, #tpu.dimension_semantics<parallel>], iteration_bounds = array<i64: 2, 1, 1>, scalar_prefetch = 0 : i64, scratch_operands = 0 : i64, tpu.core_type = #tpu.core_type<tc>, window_params = [{transform_indices = @transform_0, window_bounds = array<i64: 4, 32, 16>}, {transform_indices = @transform_1, window_bounds = array<i64: 4, 16, 32>}, {transform_indices = @transform_2, window_bounds = array<i64: 4, 32, 16>}]} {
    %c0 = arith.constant 0 : index
    %c0_0 = arith.constant 0 : index
    %c0_1 = arith.constant 0 : index
    %0 = vector.load %arg3[%c0, %c0_0, %c0_1] : memref<4x32x16xf32, #tpu.memory_space<vmem>>, vector<1x32x16xf32>
    %1 = vector.shape_cast %0 : vector<1x32x16xf32> to vector<32x16xf32>
    %c0_2 = arith.constant 0 : index
    %c0_3 = arith.constant 0 : index
    %c0_4 = arith.constant 0 : index
    %2 = vector.load %arg4[%c0_2, %c0_3, %c0_4] : memref<4x16x32xf32, #tpu.memory_space<vmem>>, vector<1x16x32xf32>
    %3 = vector.shape_cast %2 : vector<1x16x32xf32> to vector<16x32xf32>
    %4 = tpu.transpose %3, [1, 0] : vector<16x32xf32> -> vector<32x16xf32>
    %5 = arith.maximumf %1, %4 : vector<32x16xf32>
    %c0_5 = arith.constant 0 : index
    %c0_6 = arith.constant 0 : index
    %c0_7 = arith.constant 0 : index
    %6 = vector.load %arg5[%c0_5, %c0_6, %c0_7] : memref<4x32x16xf32, #tpu.memory_space<vmem>>, vector<1x32x16xf32>
    %7 = vector.shape_cast %6 : vector<1x32x16xf32> to vector<32x16xf32>
    %8 = vector.shape_cast %5 : vector<32x16xf32> to vector<1x32x16xf32>
    tpu.vector_store %arg5[%c0_5, %c0_6, %c0_7], %8 {strides = array<i32>} : memref<4x32x16xf32, #tpu.memory_space<vmem>>, vector<1x32x16xf32>,
    %c1 = arith.constant 1 : index
    %c0_8 = arith.constant 0 : index
    %c0_9 = arith.constant 0 : index
    %9 = vector.load %arg3[%c1, %c0_8, %c0_9] : memref<4x32x16xf32, #tpu.memory_space<vmem>>, vector<1x32x16xf32>
    %10 = vector.shape_cast %9 : vector<1x32x16xf32> to vector<32x16xf32>
    %c1_10 = arith.constant 1 : index
    %c0_11 = arith.constant 0 : index
    %c0_12 = arith.constant 0 : index
    %11 = vector.load %arg4[%c1_10, %c0_11, %c0_12] : memref<4x16x32xf32, #tpu.memory_space<vmem>>, vector<1x16x32xf32>
    %12 = vector.shape_cast %11 : vector<1x16x32xf32> to vector<16x32xf32>
    %13 = tpu.transpose %12, [1, 0] : vector<16x32xf32> -> vector<32x16xf32>
    %14 = arith.maximumf %10, %13 : vector<32x16xf32>
    %c1_13 = arith.constant 1 : index
    %c0_14 = arith.constant 0 : index
    %c0_15 = arith.constant 0 : index
    %15 = vector.load %arg5[%c1_13, %c0_14, %c0_15] : memref<4x32x16xf32, #tpu.memory_space<vmem>>, vector<1x32x16xf32>
    %16 = vector.shape_cast %15 : vector<1x32x16xf32> to vector<32x16xf32>
    %17 = vector.shape_cast %14 : vector<32x16xf32> to vector<1x32x16xf32>
    tpu.vector_store %arg5[%c1_13, %c0_14, %c0_15], %17 {strides = array<i32>} : memref<4x32x16xf32, #tpu.memory_space<vmem>>, vector<1x32x16xf32>,
    %c2 = arith.constant 2 : index
    %c0_16 = arith.constant 0 : index
    %c0_17 = arith.constant 0 : index
    %18 = vector.load %arg3[%c2, %c0_16, %c0_17] : memref<4x32x16xf32, #tpu.memory_space<vmem>>, vector<1x32x16xf32>
    %19 = vector.shape_cast %18 : vector<1x32x16xf32> to vector<32x16xf32>
    %c2_18 = arith.constant 2 : index
    %c0_19 = arith.constant 0 : index
    %c0_20 = arith.constant 0 : index
    %20 = vector.load %arg4[%c2_18, %c0_19, %c0_20] : memref<4x16x32xf32, #tpu.memory_space<vmem>>, vector<1x16x32xf32>
    %21 = vector.shape_cast %20 : vector<1x16x32xf32> to vector<16x32xf32>
    %22 = tpu.transpose %21, [1, 0] : vector<16x32xf32> -> vector<32x16xf32>
    %23 = arith.maximumf %19, %22 : vector<32x16xf32>
    %c2_21 = arith.constant 2 : index
    %c0_22 = arith.constant 0 : index
    %c0_23 = arith.constant 0 : index
    %24 = vector.load %arg5[%c2_21, %c0_22, %c0_23] : memref<4x32x16xf32, #tpu.memory_space<vmem>>, vector<1x32x16xf32>
    %25 = vector.shape_cast %24 : vector<1x32x16xf32> to vector<32x16xf32>
    %26 = vector.shape_cast %23 : vector<32x16xf32> to vector<1x32x16xf32>
    tpu.vector_store %arg5[%c2_21, %c0_22, %c0_23], %26 {strides = array<i32>} : memref<4x32x16xf32, #tpu.memory_space<vmem>>, vector<1x32x16xf32>,
    %c3 = arith.constant 3 : index
    %c0_24 = arith.constant 0 : index
    %c0_25 = arith.constant 0 : index
    %27 = vector.load %arg3[%c3, %c0_24, %c0_25] : memref<4x32x16xf32, #tpu.memory_space<vmem>>, vector<1x32x16xf32>
    %28 = vector.shape_cast %27 : vector<1x32x16xf32> to vector<32x16xf32>
    %c3_26 = arith.constant 3 : index
    %c0_27 = arith.constant 0 : index
    %c0_28 = arith.constant 0 : index
    %29 = vector.load %arg4[%c3_26, %c0_27, %c0_28] : memref<4x16x32xf32, #tpu.memory_space<vmem>>, vector<1x16x32xf32>
    %30 = vector.shape_cast %29 : vector<1x16x32xf32> to vector<16x32xf32>
    %31 = tpu.transpose %30, [1, 0] : vector<16x32xf32> -> vector<32x16xf32>
    %32 = arith.maximumf %28, %31 : vector<32x16xf32>
    %c3_29 = arith.constant 3 : index
    %c0_30 = arith.constant 0 : index
    %c0_31 = arith.constant 0 : index
    %33 = vector.load %arg5[%c3_29, %c0_30, %c0_31] : memref<4x32x16xf32, #tpu.memory_space<vmem>>, vector<1x32x16xf32>
    %34 = vector.shape_cast %33 : vector<1x32x16xf32> to vector<32x16xf32>
    %35 = vector.shape_cast %32 : vector<32x16xf32> to vector<1x32x16xf32>
    tpu.vector_store %arg5[%c3_29, %c0_30, %c0_31], %35 {strides = array<i32>} : memref<4x32x16xf32, #tpu.memory_space<vmem>>, vector<1x32x16xf32>,
    return
  }
  func.func @transform_0(%arg0: i32, %arg1: i32, %arg2: i32) -> (i32, i32, i32) {
    %c0_i32 = arith.constant 0 : i32
    return %arg0, %arg1, %arg2 : i32, i32, i32
  }
  func.func @transform_1(%arg0: i32, %arg1: i32, %arg2: i32) -> (i32, i32, i32) {
    %c0_i32 = arith.constant 0 : i32
    return %arg0, %arg2, %arg1 : i32, i32, i32
  }
  func.func @transform_2(%arg0: i32, %arg1: i32, %arg2: i32) -> (i32, i32, i32) {
    %c0_i32 = arith.constant 0 : i32
    return %arg0, %arg1, %arg2 : i32, i32, i32
  }
}

</mosaic_0001>

<bundles_post_ra>
// kernel: tpu_custom_call.1
= control target key start
LH: loop header
LB: loop body
LE: loop exit
PB: predicated region body
PF: predicated region fallthrough
CT: control target
= control target key end

     0   :  { %s703_s9 = smov 0   ;;  %s705_s10 = smov 0   ;;  %s791_s0 = inlined_call_operand.vmem [shape: f32[8,32,16], index: 0, kind: input, shape index: {}]   ;;  %s792_s1 = inlined_call_operand.vmem [shape: f32[8,16,32], index: 1, kind: input, shape index: {}]   ;;  %s793_s2 = inlined_call_operand.vmem [shape: f32[8,32,16], index: 2, kind: output, shape index: {}]  }
   0x1   :  { %s707_s11 = smov 0  }
   0x2 LB: > { %s31_s12 = sadd.s32 1, %s682_s10  ;;  %p594_p0 = scmp.ge.s32.totalorder %s686_s11, 1  ;;  %s686_s11 = sphi %s707_s11, %s12_s11   ;;  %s682_s10 = sphi %s705_s10, %s795_s10   ;;  %s678_s9 = sphi %s703_s9, %s794_s9  }
   0x3   : > { %p33_p1 = scmp.ge.s32.totalorder %s31_s12, 2  ;;  %p173_p2 = scmp.lt.s32.totalorder %s686_s11, 3 }
   0x5   : > { %s797_s12 = smov (%p33_p1, %s31_s12), 0  ;;  %p174_p3 = pnand %p594_p0, %p173_p2 }
   0x6   : > { %s595_s13 = sshll.u32 (!%p174_p3), %s678_s9, 2  ;;  %vm311_vm0 = vcmask (!%p174_p3), 130048  }
   0x7   : > { %177 = sbr.rel (%p174_p3) target bundleno = 178 (0xb2), region = 28  ;;  %p226_p4 = scmp.lt.s32.totalorder (!%p174_p3), %s595_s13, 7 }
   0xe   : > { %s799_s13 = smov (!%p226_p4, %s595_s13), 7 }
   0xf   : > { %s637_s14 = sshll.u32 %s799_s13, 4  ;;  %s636_s18 = sshll.u32 %s799_s13, 5 }
  0x10   : > { %s251_s17 = scalar_lea.vmem %s792_s1, %s637_s14  ;;  %s727_s21 = scalar_lea.vmem %s791_s0, %s636_s18 }
  0x11   : > { %v273_v0 = vld [vmem:[%s251_s17] sm:$0xff]  ;;  %v608_v1 = vld [vmem:[%s251_s17 + $0x10] sm:$0xff]  ;;  %v274_v2 = vld [vmem:[%s251_s17 + $0x8] sm:$0xff]  ;;  %s734_s24 = scalar_lea.vmem %s793_s2, %s636_s18 }
  0x12   : > { %275 = vxpose.xlu0.b32.start [1/2] (short) (narrow) %v273_v0, 32  ;;  %324 = vxpose.xlu1.b32.start [1/2] (short) (narrow) %v608_v1, 32  ;;  %v609_v3 = vld [vmem:[%s251_s17 + $0x18] sm:$0xff]  ;;  %v618_v4 = vld [vmem:[%s251_s17 + $0x20] sm:$0xff]  ;;  %v628_v5 = vld [vmem:[%s251_s17 + $0x30] sm:$0xff] }
  0x13   : > { %v619_v6 = vld [vmem:[%s251_s17 + $0x28] sm:$0xff]  ;;  %v629_v7 = vld [vmem:[%s251_s17 + $0x38] sm:$0xff]  ;;  %v269_v8 = vld [vmem:[%s727_s21] sm:$0xff] }
  0x14   : > { %v604_v9 = vld [vmem:[%s727_s21 + $0x20] sm:$0xff]  ;;  %v270_v14 = vld [vmem:[%s727_s21 + $0x8] sm:$0xff]  ;;  %v271_v20 = vld [vmem:[%s727_s21 + $0x10] sm:$0xff] }
  0x15   : > { %v605_v15 = vld [vmem:[%s727_s21 + $0x28] sm:$0xff]  ;;  %v606_v21 = vld [vmem:[%s727_s21 + $0x30] sm:$0xff]  ;;  %v272_v26 = vld [vmem:[%s727_s21 + $0x18] sm:$0xff] }
  0x16   : > { %276 = vxpose.xlu0.b32.end [2/2] (short) (narrow) %v274_v2, 32  ;;  %325 = vxpose.xlu1.b32.end [2/2] (short) (narrow) %v609_v3, 32  ;;  %v607_v27 = vld [vmem:[%s727_s21 + $0x38] sm:$0xff]  ;;  %v614_v32 = vld [vmem:[%s727_s21 + $0x40] sm:$0xff]  ;;  %v615_v38 = vld [vmem:[%s727_s21 + $0x48] sm:$0xff] }
  0x17   : > { %v624_v33 = vld [vmem:[%s727_s21 + $0x60] sm:$0xff]  ;;  %v625_v39 = vld [vmem:[%s727_s21 + $0x68] sm:$0xff]  ;;  %v616_v44 = vld [vmem:[%s727_s21 + $0x50] sm:$0xff] }
  0x18   : > { %v626_v45 = vld [vmem:[%s727_s21 + $0x70] sm:$0xff]  ;;  %v617_v50 = vld [vmem:[%s727_s21 + $0x58] sm:$0xff] }
  0x19   : > { %v627_v51 = vld [vmem:[%s727_s21 + $0x78] sm:$0xff] }
  0x1f   : > { %373 = vxpose.xlu0.b32.start [1/2] (short) (narrow) %v618_v4, 32  ;;  %422 = vxpose.xlu1.b32.start [1/2] (short) (narrow) %v628_v5, 32 }
  0x23   : > { %374 = vxpose.xlu0.b32.end [2/2] (short) (narrow) %v619_v6, 32  ;;  %423 = vxpose.xlu1.b32.end [2/2] (short) (narrow) %v629_v7, 32 }
  0x92   : > { %v291_v10 = vpop.trf.xlu0  ;;  %v340_v11 = vpop.trf.xlu1 }
  0x93   : > { %v307_v12 = vmax.f32 %v269_v8, %v291_v10  ;;  %v356_v13 = vmax.f32 %v604_v9, %v340_v11 }
  0x95   : > { %312 = vst.msk [vmem:[%s734_s24] sm:$0xff] %vm311_vm0, %v307_v12  ;;  %610 = vst.msk [vmem:[%s734_s24 + $0x20] sm:$0xff] %vm311_vm0, %v356_v13 }
  0x96   : > { %v292_v16 = vpop.trf.xlu0  ;;  %v341_v17 = vpop.trf.xlu1 }
  0x97   : > { %v308_v18 = vmax.f32 %v270_v14, %v292_v16  ;;  %v357_v19 = vmax.f32 %v605_v15, %v341_v17 }
  0x99   : > { %313 = vst.msk [vmem:[%s734_s24 + $0x8] sm:$0xff] %vm311_vm0, %v308_v18  ;;  %611 = vst.msk [vmem:[%s734_s24 + $0x28] sm:$0xff] %vm311_vm0, %v357_v19 }
  0x9a   : > { %v293_v22 = vpop.trf.xlu0  ;;  %v342_v23 = vpop.trf.xlu1 }
  0x9b   : > { %v309_v24 = vmax.f32 %v271_v20, %v293_v22  ;;  %v358_v25 = vmax.f32 %v606_v21, %v342_v23 }
  0x9d   : > { %314 = vst.msk [vmem:[%s734_s24 + $0x10] sm:$0xff] %vm311_vm0, %v309_v24  ;;  %612 = vst.msk [vmem:[%s734_s24 + $0x30] sm:$0xff] %vm311_vm0, %v358_v25 }
  0x9e   : > { %v294_v28 = vpop.trf.xlu0  ;;  %v343_v29 = vpop.trf.xlu1 }
  0x9f   : > { %v310_v30 = vmax.f32 %v272_v26, %v294_v28  ;;  %v359_v31 = vmax.f32 %v607_v27, %v343_v29 }
  0xa1   : > { %315 = vst.msk [vmem:[%s734_s24 + $0x18] sm:$0xff] %vm311_vm0, %v310_v30  ;;  %613 = vst.msk [vmem:[%s734_s24 + $0x38] sm:$0xff] %vm311_vm0, %v359_v31 }
  0xa2   : > { %v389_v34 = vpop.trf.xlu0  ;;  %v438_v35 = vpop.trf.xlu1 }
  0xa3   : > { %v405_v36 = vmax.f32 %v614_v32, %v389_v34  ;;  %v454_v37 = vmax.f32 %v624_v33, %v438_v35 }
  0xa5   : > { %620 = vst.msk [vmem:[%s734_s24 + $0x40] sm:$0xff] %vm311_vm0, %v405_v36  ;;  %630 = vst.msk [vmem:[%s734_s24 + $0x60] sm:$0xff] %vm311_vm0, %v454_v37 }
  0xa6   : > { %v390_v40 = vpop.trf.xlu0  ;;  %v439_v41 = vpop.trf.xlu1 }
  0xa7   : > { %v406_v42 = vmax.f32 %v615_v38, %v390_v40  ;;  %v455_v43 = vmax.f32 %v625_v39, %v439_v41 }
  0xa9   : > { %621 = vst.msk [vmem:[%s734_s24 + $0x48] sm:$0xff] %vm311_vm0, %v406_v42  ;;  %631 = vst.msk [vmem:[%s734_s24 + $0x68] sm:$0xff] %vm311_vm0, %v455_v43 }
  0xaa   : > { %v391_v46 = vpop.trf.xlu0  ;;  %v440_v47 = vpop.trf.xlu1 }
  0xab   : > { %v407_v48 = vmax.f32 %v616_v44, %v391_v46  ;;  %v456_v49 = vmax.f32 %v626_v45, %v440_v47 }
  0xad   : > { %622 = vst.msk [vmem:[%s734_s24 + $0x50] sm:$0xff] %vm311_vm0, %v407_v48  ;;  %632 = vst.msk [vmem:[%s734_s24 + $0x70] sm:$0xff] %vm311_vm0, %v456_v49 }
  0xae   : > { %v392_v52 = vpop.trf.xlu0  ;;  %v441_v53 = vpop.trf.xlu1 }
  0xaf   : > { %v408_v54 = vmax.f32 %v617_v50, %v392_v52  ;;  %v457_v55 = vmax.f32 %v627_v51, %v441_v53 }
  0xb1   : > { %623 = vst.msk [vmem:[%s734_s24 + $0x58] sm:$0xff] %vm311_vm0, %v408_v54  ;;  %633 = vst.msk [vmem:[%s734_s24 + $0x78] sm:$0xff] %vm311_vm0, %v457_v55 }
  0xb2 PF: > { %s12_s11 = sadd.s32 1, %s686_s11   ;;  %s794_s9 = smov %s682_s10 }
  0xb3   : > { %p9_p5 = scmp.ge.s32.totalorder %s12_s11, 4   ;;  %s795_s10 = smov %s797_s12 }
  0xb5   :  { %11 = sbr.rel (!%p9_p5) target bundleno = 2 (0x2), region = 70 }

</bundles_post_ra>
